<compile_context>
chip_gen: v6e
topology: v6e:2x2x1
jax: 0.10.0
libtpu: 0.0.40
codegen_flags: <defaults>
</compile_context>

<pallas_src>
import functools

import numpy as np
import jax
import jax.numpy as jnp
from jax import lax
from jax.experimental import pallas as pl
from jax.experimental.pallas import tpu as pltpu

H = W = 16
HW = H * W
_BN_EPS = 1e-5

# (Cin, Cout, K, has_bn_relu) -- mirrors the PyTorch module.
_LAYER_DEFS = [
    (3, 12, 5, True),
    (12, 16, 7, True),
    (16, 24, 9, True),
    (24, 24, 9, True),
    (24, 24, 9, True),
    (24, 24, 9, True),
    (24, 16, 9, True),
    (16, 12, 7, True),
    (12, 2, 5, False),
]


def _pad16(c):
    # bf16 packs 2 rows per 32-bit sublane -> native tile is (16, 128); padding
    # channels to 16 keeps every per-tap col store / chunk load tile-aligned.
    return max(16, ((c + 15) // 16) * 16)


# Channel-padded layer config used by the kernel: (cin_p, cout_p, K, relu).
_LAYER_CFG = tuple((_pad16(ci), _pad16(co), k, bn) for (ci, co, k, bn) in _LAYER_DEFS)
_MASK_KEYS = tuple(sorted({k for (_, _, k, _) in _LAYER_DEFS}))        # (5, 7, 9)
_MAX_COUT_P = max(co for (_, co, _, _) in _LAYER_CFG)                  # 32
_MAX_COLS = max(k * k * cin_p for (cin_p, _, k, _) in _LAYER_CFG)      # 2592


# -----------------------------------------------------------------------------
# Fused kernel: whole network for one lane-batched block (one grid step).
# -----------------------------------------------------------------------------
def _shadow_net_kernel(x_ref, *refs, roll_like_jnp, lanes):
    # refs: 9 weight refs (K, cout_p, K*cin_p) bf16, shifts (9, 32, 1) f32,
    #       mask5 / mask7 / mask9 (K*K, 1, lanes) f32,
    #       o_ref (1, cout_last_p, lanes) f32, col scratch (_MAX_COLS, lanes) bf16.
    nl = len(_LAYER_CFG)
    nm = len(_MASK_KEYS)
    w_refs = refs[:nl]
    shift_ref = refs[nl]
    mask_refs = dict(zip(_MASK_KEYS, refs[nl + 1:nl + 1 + nm]))
    o_ref = refs[nl + 1 + nm]
    col_ref = refs[nl + 2 + nm]

    act = x_ref[0]                                   # (cin_p0, lanes) f32
    for l, (cin_p, cout_p, K, relu) in enumerate(_LAYER_CFG):
        pd = K // 2
        m_ref = mask_refs[K]
        y = jnp.zeros((cout_p, lanes), jnp.float32)  # f32 accumulator (vregs)
        for kh in range(K):
            # ---- build one kh-row chunk of the im2col matrix (K taps) ----
            for kw in range(K):
                t = kh * K + kw
                s = (kh - pd) * W + (kw - pd)        # flat spatial shift of this tap
                if s == 0:
                    blk = act                        # centre tap: no shift / no border
                else:
                    amt = (-s) % lanes if roll_like_jnp else s % lanes
                    # Roll over the whole lane-batch; positions whose source
                    # crosses an image boundary are exactly the masked ones.
                    blk = pltpu.roll(act, shift=amt, axis=1) * m_ref[t]
                col_ref[pl.ds(t * cin_p, cin_p), :] = blk.astype(jnp.bfloat16)
            # ---- accumulate this chunk right away: MXU overlaps next stores ----
            chunk = col_ref[pl.ds(kh * K * cin_p, K * cin_p), :]
            y = y + jnp.dot(w_refs[l][kh], chunk,
                            preferred_element_type=jnp.float32)
        # BN scale already folded into the weights; add folded shift, ReLU.
        y = y + shift_ref[l][0:cout_p, :]
        if relu:
            y = jnp.maximum(y, 0.0)
        act = y
    o_ref[0] = act                                   # (cout_last_p, lanes); padded rows are zeros


# -----------------------------------------------------------------------------
# Parameter construction & host-side packing (done once, outside the fwd path).
# -----------------------------------------------------------------------------
def init_params(key):
    params = []
    for (cin, cout, k, has_bn) in _LAYER_DEFS:
        key, kw_, kb, kg, kbeta, km, kv = jax.random.split(key, 7)
        fan_in = cin * k * k
        bound = 1.0 / np.sqrt(fan_in)
        w = jax.random.uniform(kw_, (cout, cin, k, k), jnp.float32, -bound, bound)
        b = jax.random.uniform(kb, (cout,), jnp.float32, -bound, bound)
        if has_bn:
            gamma = jax.random.uniform(kg, (cout,), jnp.float32, 0.5, 1.5)
            beta = jax.random.uniform(kbeta, (cout,), jnp.float32, -0.5, 0.5)
            rmean = jax.random.uniform(km, (cout,), jnp.float32, -0.1, 0.1)
            rvar = jax.random.uniform(kv, (cout,), jnp.float32, 0.5, 1.5)
        else:
            gamma = beta = rmean = rvar = None
        params.append(dict(w=w, b=b, gamma=gamma, beta=beta, rmean=rmean,
                           rvar=rvar, K=k, has_bn=has_bn))
    return params


def pack_params(params):
    """Fold BN into weights/shifts, pad channels to 16, lay weights out per kh-row."""
    w_mats = []
    shifts = np.zeros((len(params), _MAX_COUT_P, 1), np.float32)
    for l, (p, (cin_p, cout_p, K, _)) in enumerate(zip(params, _LAYER_CFG)):
        w = np.asarray(p["w"], np.float32)           # (cout, cin, K, K)
        b = np.asarray(p["b"], np.float32)
        cout, cin = w.shape[0], w.shape[1]
        if p["has_bn"]:
            s = np.asarray(p["gamma"]) / np.sqrt(np.asarray(p["rvar"]) + _BN_EPS)
            sh = (b - np.asarray(p["rmean"])) * s + np.asarray(p["beta"])
        else:
            s = np.ones((cout,), np.float32)
            sh = b
        # Fold BN scale into the weight rows:  (s*W)@patches == s*(W@patches).
        w = w * s[:, None, None, None]
        # (cout, cin, kh, kw) -> (kh, cout, kw, cin) -> (K, cout_p, K*cin_p):
        # chunk kh's columns are ordered (kw, cin), matching the col layout.
        wt = np.transpose(w, (2, 0, 3, 1))
        wp = np.zeros((K, cout_p, K, cin_p), np.float32)
        wp[:, :cout, :, :cin] = wt
        w_mats.append(jnp.asarray(wp.reshape(K, cout_p, K * cin_p),
                                  dtype=jnp.bfloat16))
        shifts[l, :cout, 0] = sh

    # 'same'-padding border masks: one (1, HW) row per tap, per distinct K
    # (tiled to the lane-batch width in the forward wrapper).
    hh = np.arange(HW) // W
    ww = np.arange(HW) % W
    masks = {}
    for K in _MASK_KEYS:
        pd = K // 2
        m = np.zeros((K * K, 1, HW), np.float32)
        for kh in range(K):
            for kw in range(K):
                dh, dw = kh - pd, kw - pd
                valid = ((hh + dh >= 0) & (hh + dh < H) &
                         (ww + dw >= 0) & (ww + dw < W))
                m[kh * K + kw, 0] = valid.astype(np.float32)
        masks[K] = jnp.asarray(m)
    return w_mats, jnp.asarray(shifts), masks


# -----------------------------------------------------------------------------
# Roll-direction probe (tiny one-off kernel; makes the lane-shift sign robust).
# -----------------------------------------------------------------------------
def _probe_roll_like_jnp():
    def k(x_ref, o_ref):
        o_ref[...] = pltpu.roll(x_ref[...], shift=1, axis=1)
    x = jnp.broadcast_to(jnp.arange(128, dtype=jnp.float32), (8, 128))
    y = pl.pallas_call(k, out_shape=jax.ShapeDtypeStruct((8, 128), jnp.float32))(x)
    return bool(np.asarray(y)[0, 0] == 127.0)        # jnp.roll(x, 1)[..., 0] == x[..., -1]


# -----------------------------------------------------------------------------
# Full network forward (NCHW in / NCHW out, like the PyTorch module).
# -----------------------------------------------------------------------------
def shadow_net_forward(x_nchw, packed, roll_like_jnp=True, images_per_block=None):
    w_mats, shifts, masks = packed
    N, C, Hi, Wi = x_nchw.shape
    assert (Hi, Wi) == (H, W) and C == _LAYER_DEFS[0][0]
    cin_p0 = _LAYER_CFG[0][0]
    cout_last = _LAYER_DEFS[-1][1]
    cout_last_p = _LAYER_CFG[-1][1]

    if images_per_block is None:
        # Whole (small) batch in one lane-block -> single pass on 1-TC v5e/v6e.
        # For v7x 2-TC use, pass images_per_block = pl.cdiv(N, 2).  8 images/block
        # keeps the bf16 col scratch ~10 MB, far inside v7x's 64 MiB VMEM.
        images_per_block = min(N, 8)
    nb = images_per_block
    num_blocks = pl.cdiv(N, nb)
    n_pad = num_blocks * nb
    lanes = nb * HW

    # NCHW -> (num_blocks, Cpad, nb*HW): channels on sublanes, batch folded
    # into the lane axis (all lane-dense).
    x = x_nchw.astype(jnp.float32).reshape(N, C, HW)
    if n_pad != N:
        x = jnp.pad(x, ((0, n_pad - N), (0, 0), (0, 0)))
    x = x.reshape(num_blocks, nb, C, HW).transpose(0, 2, 1, 3)
    x = x.reshape(num_blocks, C, lanes)
    x = jnp.pad(x, ((0, 0), (0, cin_p0 - C), (0, 0)))

    # Tile per-image border masks across the lane-batch.
    masks_t = {k: jnp.tile(masks[k], (1, 1, nb)) for k in _MASK_KEYS}

    kernel = functools.partial(_shadow_net_kernel,
                               roll_like_jnp=roll_like_jnp, lanes=lanes)

    const3 = lambda n: (0, 0, 0)
    in_specs = [pl.BlockSpec((1, cin_p0, lanes), lambda n: (n, 0, 0))]
    in_specs += [pl.BlockSpec(wm.shape, const3) for wm in w_mats]
    in_specs += [pl.BlockSpec(shifts.shape, const3)]
    in_specs += [pl.BlockSpec(masks_t[k].shape, const3) for k in _MASK_KEYS]

    # VMEM budget from the actual footprint (col + weights + masks + I/O blocks,
    # double-buffered inputs) plus headroom for compiler scratch / spills.
    col_bytes = _MAX_COLS * lanes * 2
    w_bytes = sum(int(np.prod(wm.shape)) * 2 for wm in w_mats)
    m_bytes = sum(int(np.prod(masks_t[k].shape)) * 4 for k in _MASK_KEYS)
    io_bytes = (cin_p0 + cout_last_p) * lanes * 4
    vmem_limit = int(col_bytes + 2 * (w_bytes + m_bytes + io_bytes) + (16 << 20))

    out = pl.pallas_call(
        kernel,
        out_shape=jax.ShapeDtypeStruct((num_blocks, cout_last_p, lanes), jnp.float32),
        grid=(num_blocks,),
        in_specs=in_specs,
        out_specs=pl.BlockSpec((1, cout_last_p, lanes), lambda n: (n, 0, 0)),
        scratch_shapes=[pltpu.VMEM((_MAX_COLS, lanes), jnp.bfloat16)],  # im2col buf
        compiler_params=pltpu.CompilerParams(
            dimension_semantics=("parallel",),        # blocks across TCs on v7x
            vmem_limit_bytes=vmem_limit),
    )(x, *w_mats, shifts, *[masks_t[k] for k in _MASK_KEYS])

    # (num_blocks, Cp, nb*HW) -> (N, 2, H, W)
    out = out.reshape(num_blocks, cout_last_p, nb, HW).transpose(0, 2, 1, 3)
    out = out.reshape(n_pad, cout_last_p, H, W)
    return out[:N, :cout_last]


# Pure-JAX reference (eval-mode BN), for correctness checking only.
def shadow_net_reference(x_nchw, params):
    x = jnp.transpose(x_nchw, (0, 2, 3, 1)).astype(jnp.float32)
    for p in params:
        w_hwio = jnp.transpose(p["w"], (2, 3, 1, 0))
        pad = p["K"] // 2
        y = lax.conv_general_dilated(
            x, w_hwio, window_strides=(1, 1),
            padding=((pad, pad), (pad, pad)),
            dimension_numbers=("NHWC", "HWIO", "NHWC")) + p["b"]
        if p["has_bn"]:
            y = (y - p["rmean"]) / jnp.sqrt(p["rvar"] + _BN_EPS) * p["gamma"] \
                + p["beta"]
            y = jnp.maximum(y, 0.0)
        x = y
    return jnp.transpose(x, (0, 3, 1, 2))


if __name__ == "__main__":
    key = jax.random.PRNGKey(0)
    key, kx = jax.random.split(key)
    params = init_params(key)
    packed = pack_params(params)          # fold/pack once, outside the fwd path

    # Small input consistent with the module: N=2, C=3 (conv1 in-channels), 16x16.
    x = jax.random.normal(kx, (2, 3, 16, 16), dtype=jnp.float32)

    roll_like_jnp = _probe_roll_like_jnp()
    fwd = jax.jit(functools.partial(shadow_net_forward,
                                    roll_like_jnp=roll_like_jnp))

    out = jax.block_until_ready(fwd(x, packed))
    assert out.shape == (2, 2, 16, 16), out.shape

    ref = jax.block_until_ready(shadow_net_reference(x, params))
    # Weights/patches are bf16 (f32 accumulation), so compare at bf16-level
    # tolerance against the f32 reference.
    np.testing.assert_allclose(np.asarray(out), np.asarray(ref),
                               rtol=2e-2, atol=2e-2)
    print("KERNEL_OK")
</pallas_src>

<mosaic_0001>
module attributes {stable_mosaic.version = 11 : i64} {
  func.func @k(%arg0: memref<8x128xf32, #tpu.memory_space<vmem>>, %arg1: memref<8x128xf32, #tpu.memory_space<vmem>>) attributes {dimension_semantics = [], scalar_prefetch = 0 : i64, scratch_operands = 0 : i64, tpu.core_type = #tpu.core_type<tc>} {
    %c0 = arith.constant 0 : index
    %c0_0 = arith.constant 0 : index
    %0 = vector.load %arg0[%c0, %c0_0] : memref<8x128xf32, #tpu.memory_space<vmem>>, vector<8x128xf32>
    %c1_i32 = arith.constant 1 : i32
    %1 = tpu.dynamic_rotate %0 by %c1_i32 dim 1 : vector<8x128xf32>, i32 -> vector<8x128xf32>
    %c0_1 = arith.constant 0 : index
    %c0_2 = arith.constant 0 : index
    %2 = vector.load %arg1[%c0_1, %c0_2] : memref<8x128xf32, #tpu.memory_space<vmem>>, vector<8x128xf32>
    tpu.vector_store %arg1[%c0_1, %c0_2], %1 {strides = array<i32>} : memref<8x128xf32, #tpu.memory_space<vmem>>, vector<8x128xf32>,
    return
  }
}

</mosaic_0001>

<bundles_post_ra>
// kernel: tpu_custom_call.1
= control target key start
LH: loop header
LB: loop body
LE: loop exit
PB: predicated region body
PF: predicated region fallthrough
CT: control target
= control target key end

     0   :  { %6 = vsyncpa [#allocation3], 0  ;;  %s106_s0 = inlined_call_operand.hbm [shape: f32[8,128], index: 0, kind: input, shape index: {}]   ;;  %s107_s1 = inlined_call_operand.hbm [shape: f32[8,128], index: 1, kind: output, shape index: {}]  }
   0x1   :  { %7 = vsyncpa [#allocation4], 0  ;;  %s87_s6 = smov [#allocation2]  }
   0x2   :  { %s14_s7 = sshll.u32 %s87_s6, 4  ;;  %s15_s7 = int_to_ptr.vmem [resolvable:$true] %s14_s7 }
   0x3   :  { %s51_s8 = scalar_lea.vmem %s15_s7, 128  ;;  %p56_p1 = scmp.lt.s32.totalorder %s15_s7, %s15_s7 }
   0x4   :  { %p52_p0 = scmp.ne.s32.totalorder %s15_s7, %s51_s8  ;;  %p57_p2 = scmp.lt.s32.totalorder %s51_s8, %s51_s8 }
   0x6   :  { %p58_p3 = por %p57_p2, %p56_p1 }
   0x8   :  { %p59_p4 = pnand %p58_p3, %p52_p0 }
   0xa   :  { %62 = shalt.err (!%p59_p4)
}
   0xb   :  { %17 = dma.hbm_to_vmem [thread:$0]  %s106_s0, 128, %s15_s7, [#allocation3]  }
   0xc   :  { %83 = dma.done.wait [#allocation3], 128  }
   0xd   :  { %84 = vsyncadd [#allocation3], 4294967168  ;;  %v21_v0 = vld [vmem:[#allocation2] sm:$0xff]  ;;  %s88_s11 = smov 1   ;;  %s89_s12 = smov [#allocation5]  }
   0xe   :  { %22 = vrot.lane.b32.xlu0 %v21_v0, %s88_s11  ;;  %s31_s13 = sshll.u32 %s89_s12, 4  ;;  %s32_s13 = int_to_ptr.vmem [resolvable:$true] %s31_s13 }
   0xf   :  { %s63_s14 = scalar_lea.vmem %s32_s13, 128  ;;  %p68_p6 = scmp.lt.s32.totalorder %s32_s13, %s32_s13 }
  0x10   :  { %p64_p5 = scmp.ne.s32.totalorder %s32_s13, %s63_s14  ;;  %p69_p7 = scmp.lt.s32.totalorder %s63_s14, %s63_s14 }
  0x12   :  { %p70_p8 = por %p69_p7, %p68_p6 }
  0x14   :  { %p71_p9 = pnand %p70_p8, %p64_p5 }
  0x80   :  { %v23_v1 = vpop.permute.xlu0 %22 }
  0x81   :  { %24 = vst [vmem:[#allocation5] sm:$0xff] %v23_v1 }
  0x82   :  { %74 = shalt.err (!%p71_p9)
}
  0x83   :  { %34 = dma.vmem_to_hbm [thread:$0]  %s32_s13, 128, %s107_s1, [#allocation4]  }
  0x84   :  { %85 = dma.done.wait [#allocation4], 128  }
  0x85   :  { %86 = vsyncadd [#allocation4], 4294967168 }
  0x86   :  { %38 = vsyncpa [#allocation3], 1 }
  0x87   :  { %39 = vsyncpa [#allocation4], 1 }

</bundles_post_ra>
